<compile_context>
chip_gen: v6e
topology: v6e:2x2x1
jax: 0.10.0
libtpu: 0.0.40
codegen_flags: <defaults>
</compile_context>

<pallas_src>
import math

import jax
import jax.numpy as jnp
import numpy as np
from jax.experimental import pallas as pl
from jax.experimental.pallas import tpu as pltpu

_SMALL_BYPASS_BYTES = 1 << 20  # below this, jnp.reshape wins on latency


def _ceil_div(a: int, b: int) -> int:
    return -(-a // b)


def _sublane_tile(dtype) -> int:
    """Sublane tile rows of the HBM/VMEM layout: 8 f32, 16 bf16, 32 int8."""
    itemsize = jnp.dtype(dtype).itemsize
    return 8 * max(1, 4 // max(1, itemsize))


def _merge_leading_ok(shape, dtype) -> bool:
    """True iff reshaping `shape` to (prod(shape[:-1]), shape[-1]) is a
    layout-preserving bitcast on TPU (no hidden XLA relayout copy): either
    there is a single leading slab, or the second-minor dim is a multiple of
    the dtype's sublane tile."""
    if len(shape) < 2:
        return False
    if math.prod(shape[:-2]) <= 1:
        return True
    return shape[-2] % _sublane_tile(dtype) == 0


def _dma_tuning(total_bytes: int):
    """(target_chunk_bytes, max_inflight_descriptors, n_core_shards), picked
    per TPU generation (best-effort device_kind sniffing; defaults are safe)."""
    kind = ""
    try:
        kind = jax.devices()[0].device_kind.lower()
    except Exception:  # pragma: no cover - defensive
        pass
    if "v5e" in kind or "v5 lite" in kind or "v5lite" in kind:
        # v5e (~820 GB/s): a couple of large descriptors already saturate BW.
        return 8 << 20, 4, 1
    if "v7" in kind:
        # v7x: more bytes in flight, and split the copy across the 2 TCs.
        shards = 2 if total_bytes >= (16 << 20) else 1
        return 2 << 20, 32, shards
    # v6e / default.
    return 2 << 20, 16, 1


def _chunk_rows(rows, row_bytes, tile, target_bytes, max_inflight):
    """Static (row_start, row_size) chunks: ~target_bytes each (512 KiB–4 MiB
    regime), sublane-tile-aligned starts, at most max_inflight descriptors."""
    rows_per = max(1, _ceil_div(target_bytes, max(1, row_bytes)))
    rows_per = _ceil_div(rows_per, tile) * tile
    if _ceil_div(rows, rows_per) > max_inflight:
        rows_per = _ceil_div(_ceil_div(rows, max_inflight), tile) * tile
    chunks, start = [], 0
    while start < rows:
        size = min(rows_per, rows - start)
        chunks.append((start, size))
        start += size
    return chunks


def _make_chunked_copy_kernel(chunks, n_shards):
    """Kernel copying x_ref -> o_ref with direct HBM->HBM DMAs.

    All chunk DMAs owned by a core are started before any is waited on, so
    they overlap across DMA engines.  No VMEM staging; the vector core never
    touches the data.  With n_shards == 2 (v7x) the chunk list is interleaved
    across the two TensorCores via the "parallel" grid axis.
    """

    def copy_shard(x_ref, o_ref, sems, shard):
        cps = []
        for idx in range(shard, len(chunks), n_shards):  # static Python unroll
            start, size = chunks[idx]
            cp = pltpu.make_async_copy(
                x_ref.at[pl.ds(start, size)],
                o_ref.at[pl.ds(start, size)],
                sems.at[idx],
            )
            cp.start()
            cps.append(cp)
        for cp in cps:
            cp.wait()

    if n_shards == 1:
        def kernel(x_ref, o_ref, sems):
            copy_shard(x_ref, o_ref, sems, 0)
    else:
        def kernel(x_ref, o_ref, sems):
            pid = pl.program_id(0)
            for shard in range(n_shards):
                @pl.when(pid == shard)
                def _(shard=shard):
                    copy_shard(x_ref, o_ref, sems, shard)

    return kernel


def _pallas_reshape_copy(x: jax.Array, out_shape, donate: bool) -> jax.Array:
    """Layout-compatible path: x -> (rows, minor) and (rows, minor) -> out_shape
    are true bitcasts, so the only HBM traffic is the kernel's chunked
    HBM->HBM DMA (or nothing at all when the input is donated/aliased)."""
    minor = x.shape[-1]
    total = int(x.size)
    rows = total // minor
    view = (rows, minor)
    itemsize = jnp.dtype(x.dtype).itemsize
    total_bytes = total * itemsize

    xv = jnp.reshape(x, view)  # bitcast (guaranteed by caller's layout check)

    if donate:
        # Aliased pass-through: reshape never requires data movement, so the
        # output buffer IS the input buffer and the kernel body is empty.
        yv = pl.pallas_call(
            lambda x_ref, o_ref: None,
            out_shape=jax.ShapeDtypeStruct(view, x.dtype),
            in_specs=[pl.BlockSpec(memory_space=pl.ANY)],
            out_specs=pl.BlockSpec(memory_space=pl.ANY),
            input_output_aliases={0: 0},
        )(xv)
        return jnp.reshape(yv, out_shape)  # bitcast

    target_bytes, max_inflight, n_shards = _dma_tuning(total_bytes)
    tile = _sublane_tile(x.dtype)
    chunks = _chunk_rows(rows, minor * itemsize, tile, target_bytes, max_inflight)
    if len(chunks) < 2:
        n_shards = 1

    # Note (compile cache): chunk boundaries depend only on (rows, minor,
    # dtype, generation knobs), so distinct activation shapes with the same
    # flat view share a compiled kernel.
    call_kwargs = dict(
        out_shape=jax.ShapeDtypeStruct(view, x.dtype),
        in_specs=[pl.BlockSpec(memory_space=pl.ANY)],   # raw HBM ref, no auto-DMA
        out_specs=pl.BlockSpec(memory_space=pl.ANY),    # raw HBM ref, no auto-DMA
        scratch_shapes=[pltpu.SemaphoreType.DMA((len(chunks),))],
    )
    if n_shards > 1:  # v7x only: shard chunks across the 2 TensorCores
        call_kwargs["grid"] = (n_shards,)
        call_kwargs["compiler_params"] = pltpu.CompilerParams(
            dimension_semantics=("parallel",))

    yv = pl.pallas_call(_make_chunked_copy_kernel(chunks, n_shards),
                        **call_kwargs)(xv)
    return jnp.reshape(yv, out_shape)  # bitcast


def _resolve_shape(x: jax.Array, shape: tuple) -> tuple:
    shape = tuple(int(s) for s in shape)
    if shape.count(-1) > 1:
        raise ValueError("only one dimension can be inferred (-1)")
    if -1 in shape:
        known = math.prod(s for s in shape if s != -1)
        if known == 0 or x.size % known != 0:
            raise ValueError(f"cannot infer -1 for size {x.size} and shape {shape}")
        shape = tuple(x.size // known if s == -1 else s for s in shape)
    if math.prod(shape) != x.size:
        raise ValueError(f"cannot reshape array of size {x.size} into shape {shape}")
    return shape


def reshape(x: jax.Array, *shape: int, donate: bool = False) -> jax.Array:
    """JAX/Pallas equivalent of fl.Reshape(*shape): reshape to (x.shape[0], *shape)."""
    out_shape = _resolve_shape(x, (x.shape[0], *shape))

    if x.size == 0:
        return jnp.reshape(x, out_shape)

    # Small-size bypass: pallas_call launch + descriptor latency dwarfs the
    # transfer below ~1 MiB.
    if x.size * jnp.dtype(x.dtype).itemsize < _SMALL_BYPASS_BYTES:
        return jnp.reshape(x, out_shape)

    # Fast path only when the flat 2-D copy view is a true bitcast of BOTH the
    # input and the output, so no hidden XLA relayout is inserted around the
    # pallas_call.
    if (x.ndim >= 2 and len(out_shape) >= 2
            and x.shape[-1] == out_shape[-1]
            and _merge_leading_ok(x.shape, x.dtype)
            and _merge_leading_ok(out_shape, x.dtype)):
        return _pallas_reshape_copy(x, out_shape, donate)

    # Incompatible layouts: XLA would materialize a relayout copy around any
    # pallas_call anyway, so doing the reshape directly is strictly cheaper
    # ("skip the kernel when a relayout would be inserted anyway").
    # TODO(synk): dedicated VMEM-staged relayout kernel for large layout-incompatible shapes.
    return jnp.reshape(x, out_shape)


class Reshape:
    """Mirror of the PyTorch module: batch dim preserved, rest reshaped."""

    def __init__(self, *shape: int, donate: bool = False) -> None:
        self.shape = shape
        self.donate = donate

    def __call__(self, x: jax.Array) -> jax.Array:
        return reshape(x, *self.shape, donate=self.donate)


if __name__ == "__main__":
    key = jax.random.PRNGKey(0)
    k1, k2, k3, k4, k5, k6 = jax.random.split(key, 6)

    # 1) Docstring example (2,10,1) -> (2,5,2): small-size bypass.
    x1 = jax.random.normal(k1, (2, 10, 1), dtype=jnp.float32)
    y1 = jax.block_until_ready(Reshape(5, 2)(x1))
    assert y1.shape == (2, 5, 2), y1.shape
    np.testing.assert_array_equal(np.asarray(y1), np.asarray(x1).reshape(2, 5, 2))

    # 2) Small NCHW activation (2,4,16,16) -> (2,4,256): bypass (tiny + relayout).
    x2 = jax.random.normal(k2, (2, 4, 16, 16), dtype=jnp.float32)
    y2 = jax.block_until_ready(Reshape(4, 256)(x2))
    assert y2.shape == (2, 4, 256), y2.shape
    np.testing.assert_array_equal(np.asarray(y2), np.asarray(x2).reshape(2, 4, 256))

    # 3) Layout-compatible fast path, multi-chunk concurrent DMAs (4 MiB f32).
    x3 = jax.random.normal(k3, (2, 64, 64, 128), dtype=jnp.float32)
    y3 = jax.block_until_ready(Reshape(4096, 128)(x3))
    assert y3.shape == (2, 4096, 128), y3.shape
    np.testing.assert_array_equal(np.asarray(y3), np.asarray(x3).reshape(2, 4096, 128))

    # 4) Fast path with -1 inference, bf16 (dtype-aware sublane-tile chunking).
    x4 = jax.random.normal(k4, (2, 32, 64, 128), dtype=jnp.bfloat16)
    y4 = jax.block_until_ready(Reshape(-1, 128)(x4))
    assert y4.shape == (2, 2048, 128), y4.shape
    np.testing.assert_array_equal(
        np.asarray(y4.astype(jnp.float32)),
        np.asarray(x4.astype(jnp.float32)).reshape(2, 2048, 128),
    )

    # 5) Donated / aliased pass-through (input_output_aliases, no data movement).
    #    (x5 is reused below only for verification; real callers should donate it.)
    x5 = jax.random.normal(k5, (2, 32, 64, 128), dtype=jnp.float32)
    y5 = jax.block_until_ready(Reshape(-1, 128, donate=True)(x5))
    assert y5.shape == (2, 2048, 128), y5.shape
    np.testing.assert_array_equal(np.asarray(y5), np.asarray(x5).reshape(2, 2048, 128))

    # 6) Large but layout-incompatible reshape: review-endorsed jnp.reshape path.
    x6 = jax.random.normal(k6, (2, 48, 32, 96), dtype=jnp.float32)
    y6 = jax.block_until_ready(Reshape(-1)(x6))
    assert y6.shape == (2, 147456), y6.shape
    np.testing.assert_array_equal(np.asarray(y6), np.asarray(x6).reshape(2, 147456))

    print("KERNEL_OK")
</pallas_src>

<mosaic_0001>
module attributes {stable_mosaic.version = 11 : i64} {
  func.func @kernel(%arg0: memref<8192x128xf32, #tpu.memory_space<any>>, %arg1: memref<8192x128xf32, #tpu.memory_space<any>>, %arg2: memref<2x!tpu.dma_semaphore, #tpu.memory_space<semaphore_mem>>) attributes {dimension_semantics = [], scalar_prefetch = 0 : i64, scratch_operands = 1 : i64, tpu.core_type = #tpu.core_type<tc>} {
    %c0_i32 = arith.constant 0 : i32
    %c0_i32_0 = arith.constant 0 : i32
    %c0_i32_1 = arith.constant 0 : i32
    %0 = tpu.memref_slice %arg0[%c0_i32_0, %c0_i32_1] : memref<8192x128xf32, #tpu.memory_space<any>> -> memref<4096x128xf32, #tpu.memory_space<any>>
    %c0_i32_2 = arith.constant 0 : i32
    %c0_i32_3 = arith.constant 0 : i32
    %1 = tpu.memref_slice %arg1[%c0_i32_2, %c0_i32_3] : memref<8192x128xf32, #tpu.memory_space<any>> -> memref<4096x128xf32, #tpu.memory_space<any>>
    %2 = tpu.memref_slice %arg2[%c0_i32] : memref<2x!tpu.dma_semaphore, #tpu.memory_space<semaphore_mem>> -> memref<1x!tpu.dma_semaphore, #tpu.memory_space<semaphore_mem>>
    %3 = tpu.memref_squeeze %2 : memref<1x!tpu.dma_semaphore, #tpu.memory_space<semaphore_mem>> -> memref<!tpu.dma_semaphore, #tpu.memory_space<semaphore_mem>>
    tpu.enqueue_dma source(%0 : memref<4096x128xf32, #tpu.memory_space<any>>) target(%1 : memref<4096x128xf32, #tpu.memory_space<any>>) target_semaphore(%3 : memref<!tpu.dma_semaphore, #tpu.memory_space<semaphore_mem>>)
    %c1_i32 = arith.constant 1 : i32
    %c4096_i32 = arith.constant 4096 : i32
    %c0_i32_4 = arith.constant 0 : i32
    %4 = tpu.memref_slice %arg0[%c4096_i32, %c0_i32_4] : memref<8192x128xf32, #tpu.memory_space<any>> -> memref<4096x128xf32, #tpu.memory_space<any>>
    %c4096_i32_5 = arith.constant 4096 : i32
    %c0_i32_6 = arith.constant 0 : i32
    %5 = tpu.memref_slice %arg1[%c4096_i32_5, %c0_i32_6] : memref<8192x128xf32, #tpu.memory_space<any>> -> memref<4096x128xf32, #tpu.memory_space<any>>
    %6 = tpu.memref_slice %arg2[%c1_i32] : memref<2x!tpu.dma_semaphore, #tpu.memory_space<semaphore_mem>> -> memref<1x!tpu.dma_semaphore, #tpu.memory_space<semaphore_mem>>
    %7 = tpu.memref_squeeze %6 : memref<1x!tpu.dma_semaphore, #tpu.memory_space<semaphore_mem>> -> memref<!tpu.dma_semaphore, #tpu.memory_space<semaphore_mem>>
    tpu.enqueue_dma source(%4 : memref<4096x128xf32, #tpu.memory_space<any>>) target(%5 : memref<4096x128xf32, #tpu.memory_space<any>>) target_semaphore(%7 : memref<!tpu.dma_semaphore, #tpu.memory_space<semaphore_mem>>)
    %c0_i32_7 = arith.constant 0 : i32
    %c0_i32_8 = arith.constant 0 : i32
    %c0_i32_9 = arith.constant 0 : i32
    %8 = tpu.memref_slice %arg0[%c0_i32_8, %c0_i32_9] : memref<8192x128xf32, #tpu.memory_space<any>> -> memref<4096x128xf32, #tpu.memory_space<any>>
    %c0_i32_10 = arith.constant 0 : i32
    %c0_i32_11 = arith.constant 0 : i32
    %9 = tpu.memref_slice %arg1[%c0_i32_10, %c0_i32_11] : memref<8192x128xf32, #tpu.memory_space<any>> -> memref<4096x128xf32, #tpu.memory_space<any>>
    %10 = tpu.memref_slice %arg2[%c0_i32_7] : memref<2x!tpu.dma_semaphore, #tpu.memory_space<semaphore_mem>> -> memref<1x!tpu.dma_semaphore, #tpu.memory_space<semaphore_mem>>
    %11 = tpu.memref_squeeze %10 : memref<1x!tpu.dma_semaphore, #tpu.memory_space<semaphore_mem>> -> memref<!tpu.dma_semaphore, #tpu.memory_space<semaphore_mem>>
    tpu.wait_dma2 semaphore(%11 : memref<!tpu.dma_semaphore, #tpu.memory_space<semaphore_mem>>) src(%8 : memref<4096x128xf32, #tpu.memory_space<any>>) dst(%9 : memref<4096x128xf32, #tpu.memory_space<any>>)
    %c1_i32_12 = arith.constant 1 : i32
    %c4096_i32_13 = arith.constant 4096 : i32
    %c0_i32_14 = arith.constant 0 : i32
    %12 = tpu.memref_slice %arg0[%c4096_i32_13, %c0_i32_14] : memref<8192x128xf32, #tpu.memory_space<any>> -> memref<4096x128xf32, #tpu.memory_space<any>>
    %c4096_i32_15 = arith.constant 4096 : i32
    %c0_i32_16 = arith.constant 0 : i32
    %13 = tpu.memref_slice %arg1[%c4096_i32_15, %c0_i32_16] : memref<8192x128xf32, #tpu.memory_space<any>> -> memref<4096x128xf32, #tpu.memory_space<any>>
    %14 = tpu.memref_slice %arg2[%c1_i32_12] : memref<2x!tpu.dma_semaphore, #tpu.memory_space<semaphore_mem>> -> memref<1x!tpu.dma_semaphore, #tpu.memory_space<semaphore_mem>>
    %15 = tpu.memref_squeeze %14 : memref<1x!tpu.dma_semaphore, #tpu.memory_space<semaphore_mem>> -> memref<!tpu.dma_semaphore, #tpu.memory_space<semaphore_mem>>
    tpu.wait_dma2 semaphore(%15 : memref<!tpu.dma_semaphore, #tpu.memory_space<semaphore_mem>>) src(%12 : memref<4096x128xf32, #tpu.memory_space<any>>) dst(%13 : memref<4096x128xf32, #tpu.memory_space<any>>)
    return
  }
}

</mosaic_0001>

<bundles_post_ra>
// kernel: tpu_custom_call.1
= control target key start
LH: loop header
LB: loop body
LE: loop exit
PB: predicated region body
PF: predicated region fallthrough
CT: control target
= control target key end

     0   :  { %s51_s9 = smov [#allocation2]   ;;  %s52_s10 = smov 131072   ;;  %s77_s0 = inlined_call_operand.hbm [shape: f32[8192,128], index: 0, kind: input, shape index: {}]   ;;  %s78_s1 = inlined_call_operand.hbm [shape: f32[8192,128], index: 1, kind: output, shape index: {}]  }
   0x1   :  { %s13_s8 = scalar_lea.hbm %s77_s0, 65536  ;;  %s53_s11 = smov 0  }
   0x2   :  { %12 = dma.general %s77_s0, 65536, %s78_s1, %s51_s9, %s52_s10, [#allocation4], %s53_s11, 0  }
   0x3   :  { %s14_s18 = scalar_lea.hbm %s78_s1, 65536  ;;  %s54_s19 = smov [#allocation2 + $0x1]  }
   0x4   :  { %22 = dma.general %s13_s8, 65536, %s14_s18, %s54_s19, %s52_s10, [#allocation6], %s53_s11, 0  }
   0x5   :  { %47 = dma.done.wait [#allocation2], 65536 }
   0x6   :  { %48 = vsyncadd [#allocation2], 4294901760 }
   0x7   :  { %49 = dma.done.wait [#allocation2 + $0x1], 65536 }
   0x8   :  { %50 = vsyncadd [#allocation2 + $0x1], 4294901760 }
   0x9   :  { %28 = vsyncmov [#allocation2] }
   0xc   :  { %s29_s20 = vpop.sfrf %28 }
   0xd   :  { %p41_p0 = scmp.ne.s32.totalorder %s29_s20, 0 }
   0xf   :  { %33 = shalt.err (%p41_p0)  }
  0x10   :  { %35 = vsyncmov [#allocation2 + $0x1] }
  0x13   :  { %s36_s21 = vpop.sfrf %35 }
  0x14   :  { %p42_p1 = scmp.ne.s32.totalorder %s36_s21, 0 }
  0x16   :  { %40 = shalt.err (%p42_p1)  }

</bundles_post_ra>
